<compile_context>
chip_gen: v5e
topology: v5e:2x2
jax: 0.10.0
libtpu: 0.0.40
codegen_flags: <defaults>
</compile_context>

<pallas_src>
import functools
import math

import jax
import jax.numpy as jnp
from jax.experimental import pallas as pl
from jax.experimental.pallas import tpu as pltpu

EPS = 1e-5  # nn.BatchNorm1d default eps


# --------------------------------------------------------------------------
# Kernels (NCL layout: channels on sublanes, L on lanes -> lane-dense stores)
# --------------------------------------------------------------------------

def _conv1_stats_kernel(x_ref, w_ref, b_ref, h_ref, st_ref, *, K, dilation, L):
    """conv1 for one batch item + per-item BN1 partial stats.

    x_ref : (Cin, L + 2*pad)  compute dtype ('same'-padded in the wrapper)
    w_ref : (K, Cout, Cin)    compute dtype (VMEM-resident, DMA'd once)
    b_ref : (Cout, 1)         f32
    h_ref : (Cout, L)         f32 pre-BN conv output
    st_ref: (Cout, 2)         f32 [sum, sum-of-squares] over L
    """
    acc = jnp.zeros(h_ref.shape, jnp.float32)
    for k in range(K):  # K shifted accumulated matmuls; no im2col, no concat
        acc += jnp.dot(w_ref[k], x_ref[:, k * dilation:k * dilation + L],
                       preferred_element_type=jnp.float32)
    acc += b_ref[...]
    h_ref[...] = acc
    st_ref[...] = jnp.concatenate(
        [jnp.sum(acc, axis=1, keepdims=True),
         jnp.sum(acc * acc, axis=1, keepdims=True)], axis=1)


def _bn1_conv2_stats_kernel(h1_ref, sc1_ref, sh1_ref, w_ref, b_ref,
                            h2_ref, st_ref, hpad_ref, *, K, dilation, pad, L,
                            compute_dtype):
    """BN1 (scale+shift) + ReLU + conv2 + per-item BN2 partial stats.

    h1_ref : (Cout, L)        f32 pre-BN conv1 output
    sc1/sh1: (Cout, 1)        f32 folded BN1 scale / shift
    w_ref  : (K, Cout, Cout)  compute dtype
    b_ref  : (Cout, 1)        f32
    h2_ref : (Cout, L)        f32 pre-BN conv2 output
    st_ref : (Cout, 2)        f32 [sum, sum-of-squares]
    hpad_ref: (Cout, L+2*pad) compute dtype VMEM scratch ('same' pad for conv2)
    """
    Cout = h2_ref.shape[0]
    h = jnp.maximum(h1_ref[...] * sc1_ref[...] + sh1_ref[...], 0.0)

    if pad > 0:
        # Re-zero only the halo strips each step (cheap, megacore-safe: no
        # dependence on which core saw program_id == 0).
        z = jnp.zeros((Cout, pad), compute_dtype)
        hpad_ref[:, :pad] = z
        hpad_ref[:, pad + L:] = z
    hpad_ref[:, pad:pad + L] = h.astype(compute_dtype)

    acc = jnp.zeros(h2_ref.shape, jnp.float32)
    for k in range(K):
        acc += jnp.dot(w_ref[k], hpad_ref[:, k * dilation:k * dilation + L],
                       preferred_element_type=jnp.float32)
    acc += b_ref[...]
    h2_ref[...] = acc
    st_ref[...] = jnp.concatenate(
        [jnp.sum(acc, axis=1, keepdims=True),
         jnp.sum(acc * acc, axis=1, keepdims=True)], axis=1)


def _bn2_residual_kernel(h2_ref, sc2_ref, sh2_ref, x_ref, wd_ref, bd_ref,
                         out_ref):
    """BN2 (scale+shift) + 1x1-conv residual + add + final ReLU.

    h2_ref : (Cout, L) f32;  x_ref : (Cin, L) compute dtype (unpadded)
    wd_ref : (Cout, Cin);    bd_ref/sc2/sh2 : (Cout, 1) f32
    out_ref: (Cout, L) output dtype
    """
    res = jnp.dot(wd_ref[...], x_ref[...], preferred_element_type=jnp.float32)
    res += bd_ref[...]
    y = h2_ref[...] * sc2_ref[...] + sh2_ref[...] + res
    out_ref[...] = jnp.maximum(y, 0.0).astype(out_ref.dtype)


# --------------------------------------------------------------------------
# Wrapper
# --------------------------------------------------------------------------

def _batched_spec(shape):
    """Block over the leading (batch) dim, full extent on the rest."""
    n_rest = len(shape) - 1
    return pl.BlockSpec((None,) + tuple(shape[1:]),
                        lambda i, _n=n_rest: (i,) + (0,) * _n)


def _resident_spec(shape):
    """Same full block for every grid step -> DMA'd once, stays VMEM-resident."""
    nd = len(shape)
    return pl.BlockSpec(tuple(shape), lambda i, _nd=nd: (0,) * _nd)


def _nbytes(shape, dtype):
    return math.prod(shape) * jnp.dtype(dtype).itemsize


def _vmem_limit(block_bytes):
    # Double-buffered blocks + headroom; cap well under v7x's 64 MiB physical
    # VMEM (v5e/v6e have 128 MiB, so this is conservative there too).
    return int(min(max(2 * block_bytes + (4 << 20), 32 << 20), 48 << 20))


def _scale_shift(stats, gamma, beta, count):
    """Merge per-tile [sum, sumsq] partials into folded BN scale/shift."""
    sums = jnp.sum(stats.astype(jnp.float32), axis=0)          # (Cout, 2)
    mean = sums[:, 0] / count
    # TODO(synk): one-pass E[x^2]-E[x]^2 variance; switch to Welford-style
    # merging if activation magnitudes ever make cancellation an issue.
    var = sums[:, 1] / count - mean * mean
    sc = gamma * jax.lax.rsqrt(var + EPS)
    sh = beta - mean * sc
    return sc[:, None], sh[:, None]                             # (Cout, 1)


def tcn_block_pallas(x_ncl, params, *, kernel_size=3, dilation=1,
                     compute_dtype=None):
    """x_ncl: (B, Cin, L) like PyTorch.  Returns (B, Cout, L)."""
    B, Cin, L = x_ncl.shape
    Cout = params['w1'].shape[0]
    K = kernel_size
    assert (K - 1) * dilation % 2 == 0, "requires even (K-1)*dilation ('same')"
    pad = (K - 1) * dilation // 2
    Lp = L + 2 * pad
    count = B * L
    out_dtype = x_ncl.dtype
    f32 = jnp.float32
    cdt = jnp.dtype(compute_dtype) if compute_dtype is not None else jnp.dtype(out_dtype)

    # NCL kept end-to-end: no wrapper transposes. 'same' padding done once here.
    x_c = x_ncl.astype(cdt)                                     # (B, Cin, L)
    x_pad = jnp.pad(x_c, ((0, 0), (0, 0), (pad, pad)))          # (B, Cin, Lp)

    w1t = jnp.transpose(params['w1'], (2, 0, 1)).astype(cdt)    # (K, Cout, Cin)
    w2t = jnp.transpose(params['w2'], (2, 0, 1)).astype(cdt)    # (K, Cout, Cout)
    if params.get('wd') is not None:
        wdt = params['wd'][:, :, 0].astype(cdt)                 # (Cout, Cin)
        bd = params['bd'].astype(f32)[:, None]
    else:  # in_ch == out_ch: identity residual (PyTorch downsample=None)
        wdt = jnp.eye(Cout, Cin, dtype=cdt)
        bd = jnp.zeros((Cout, 1), f32)

    def col(name):
        return params[name].astype(f32)[:, None]                # (Cout, 1)

    # ---- pass 1: conv1 + per-item BN1 partial stats -------------------------
    k1 = functools.partial(_conv1_stats_kernel, K=K, dilation=dilation, L=L)
    blk1 = (_nbytes((Cin, Lp), cdt) + _nbytes((K, Cout, Cin), cdt)
            + _nbytes((Cout, L), f32) + _nbytes((Cout, 2), f32))
    h1_pre, st1 = pl.pallas_call(
        k1,
        grid=(B,),
        in_specs=[_batched_spec((B, Cin, Lp)),
                  _resident_spec((K, Cout, Cin)),
                  _resident_spec((Cout, 1))],
        out_specs=(_batched_spec((B, Cout, L)),
                   _batched_spec((B, Cout, 2))),
        out_shape=(jax.ShapeDtypeStruct((B, Cout, L), f32),
                   jax.ShapeDtypeStruct((B, Cout, 2), f32)),
        compiler_params=pltpu.CompilerParams(
            dimension_semantics=("parallel",),
            vmem_limit_bytes=_vmem_limit(blk1)),
        cost_estimate=pl.CostEstimate(
            flops=2 * B * L * K * Cin * Cout, transcendentals=0,
            bytes_accessed=_nbytes((B, Cin, Lp), cdt)
            + _nbytes((B, Cout, L), f32)),
    )(x_pad, w1t, col('b1'))

    sc1, sh1 = _scale_shift(st1, params['g1'].astype(f32),
                            params['be1'].astype(f32), count)

    # ---- pass 2: BN1 + ReLU + conv2 + per-item BN2 partial stats ------------
    k2 = functools.partial(_bn1_conv2_stats_kernel, K=K, dilation=dilation,
                           pad=pad, L=L, compute_dtype=cdt)
    blk2 = (2 * _nbytes((Cout, L), f32) + _nbytes((K, Cout, Cout), cdt)
            + _nbytes((Cout, Lp), cdt) + _nbytes((Cout, 2), f32))
    h2_pre, st2 = pl.pallas_call(
        k2,
        grid=(B,),
        in_specs=[_batched_spec((B, Cout, L)),
                  _resident_spec((Cout, 1)),
                  _resident_spec((Cout, 1)),
                  _resident_spec((K, Cout, Cout)),
                  _resident_spec((Cout, 1))],
        out_specs=(_batched_spec((B, Cout, L)),
                   _batched_spec((B, Cout, 2))),
        out_shape=(jax.ShapeDtypeStruct((B, Cout, L), f32),
                   jax.ShapeDtypeStruct((B, Cout, 2), f32)),
        scratch_shapes=[pltpu.VMEM((Cout, Lp), cdt)],
        compiler_params=pltpu.CompilerParams(
            dimension_semantics=("parallel",),
            vmem_limit_bytes=_vmem_limit(blk2)),
        cost_estimate=pl.CostEstimate(
            flops=2 * B * L * K * Cout * Cout, transcendentals=0,
            bytes_accessed=2 * _nbytes((B, Cout, L), f32)),
    )(h1_pre, sc1, sh1, w2t, col('b2'))

    sc2, sh2 = _scale_shift(st2, params['g2'].astype(f32),
                            params['be2'].astype(f32), count)

    # ---- pass 3: BN2 + 1x1 residual + add + final ReLU -----------------------
    blk3 = (_nbytes((Cout, L), f32) + _nbytes((Cin, L), cdt)
            + _nbytes((Cout, Cin), cdt) + _nbytes((Cout, L), out_dtype))
    out = pl.pallas_call(
        _bn2_residual_kernel,
        grid=(B,),
        in_specs=[_batched_spec((B, Cout, L)),
                  _resident_spec((Cout, 1)),
                  _resident_spec((Cout, 1)),
                  _batched_spec((B, Cin, L)),
                  _resident_spec((Cout, Cin)),
                  _resident_spec((Cout, 1))],
        out_specs=_batched_spec((B, Cout, L)),
        out_shape=jax.ShapeDtypeStruct((B, Cout, L), out_dtype),
        compiler_params=pltpu.CompilerParams(
            dimension_semantics=("parallel",),
            vmem_limit_bytes=_vmem_limit(blk3)),
        cost_estimate=pl.CostEstimate(
            flops=2 * B * L * Cin * Cout, transcendentals=0,
            bytes_accessed=_nbytes((B, Cout, L), f32)
            + _nbytes((B, Cin, L), cdt) + _nbytes((B, Cout, L), out_dtype)),
    )(h2_pre, sc2, sh2, x_c, wdt, bd)

    # TODO(synk): for very long L (or B smaller than the core count) also tile
    # L with a (K-1)*dilation halo carried via overlapping windows.
    # TODO(synk): BN running_mean/running_var buffer updates are not emitted;
    # st1/st2 hold the per-item sums if a caller wants to reproduce them.
    return out                                                   # (B, Cout, L)


# ---------------- pure-JAX reference (for correctness check) ----------------
def _bn_train(x_ncl, gamma, beta):
    m = jnp.mean(x_ncl, axis=(0, 2), keepdims=True)
    v = jnp.mean((x_ncl - m) ** 2, axis=(0, 2), keepdims=True)
    return (x_ncl - m) * jax.lax.rsqrt(v + EPS) * gamma[None, :, None] \
        + beta[None, :, None]


def _conv1d(x_ncl, w_oik, b, dilation, pad):
    y = jax.lax.conv_general_dilated(
        x_ncl, w_oik, window_strides=(1,), padding=[(pad, pad)],
        rhs_dilation=(dilation,),
        dimension_numbers=('NCH', 'OIH', 'NCH'))
    return y + b[None, :, None]


def tcn_block_ref(x_ncl, params, *, kernel_size=3, dilation=1):
    pad = (kernel_size - 1) * dilation // 2
    out = _conv1d(x_ncl, params['w1'], params['b1'], dilation, pad)
    out = jnp.maximum(_bn_train(out, params['g1'], params['be1']), 0.0)
    out = _conv1d(out, params['w2'], params['b2'], dilation, pad)
    out = _bn_train(out, params['g2'], params['be2'])
    res = _conv1d(x_ncl, params['wd'], params['bd'], 1, 0)
    return jnp.maximum(out + res, 0.0)


if __name__ == "__main__":
    B, in_ch, out_ch, L = 2, 4, 8, 16
    K, dilation = 3, 1

    key = jax.random.PRNGKey(0)
    ks = jax.random.split(key, 7)
    params = {
        'w1': jax.random.normal(ks[0], (out_ch, in_ch, K), jnp.float32) * 0.2,
        'b1': jax.random.normal(ks[1], (out_ch,), jnp.float32) * 0.1,
        'w2': jax.random.normal(ks[2], (out_ch, out_ch, K), jnp.float32) * 0.2,
        'b2': jax.random.normal(ks[3], (out_ch,), jnp.float32) * 0.1,
        'wd': jax.random.normal(ks[4], (out_ch, in_ch, 1), jnp.float32) * 0.2,
        'bd': jax.random.normal(ks[5], (out_ch,), jnp.float32) * 0.1,
        'g1': jnp.ones((out_ch,), jnp.float32),
        'be1': jnp.zeros((out_ch,), jnp.float32),
        'g2': jnp.ones((out_ch,), jnp.float32),
        'be2': jnp.zeros((out_ch,), jnp.float32),
    }

    x = jax.random.normal(ks[6], (B, in_ch, L), jnp.float32)

    out = tcn_block_pallas(x, params, kernel_size=K, dilation=dilation)
    out = jax.block_until_ready(out)

    ref = tcn_block_ref(x, params, kernel_size=K, dilation=dilation)
    assert out.shape == (B, out_ch, L)
    err = float(jnp.max(jnp.abs(out - ref)))
    assert jnp.allclose(out, ref, atol=2e-3, rtol=2e-3), err

    print("KERNEL_OK")
</pallas_src>

<mosaic_0001>
module attributes {stable_mosaic.version = 11 : i64} {
  func.func @_conv1_stats_kernel(%arg0: i32, %arg1: memref<1x4x18xf32, #tpu.memory_space<vmem>>, %arg2: memref<3x8x4xf32, #tpu.memory_space<vmem>>, %arg3: memref<8x1xf32, #tpu.memory_space<vmem>>, %arg4: memref<1x8x16xf32, #tpu.memory_space<vmem>>, %arg5: memref<1x8x2xf32, #tpu.memory_space<vmem>>) attributes {dimension_semantics = [#tpu.dimension_semantics<parallel>], iteration_bounds = array<i64: 2>, scalar_prefetch = 0 : i64, scratch_operands = 0 : i64, tpu.core_type = #tpu.core_type<tc>, window_params = [{transform_indices = @transform_0, window_bounds = array<i64: 1, 4, 18>}, {pipeline_mode = #tpu.pipeline_mode<synchronous>, transform_indices = @transform_1, window_bounds = array<i64: 3, 8, 4>}, {pipeline_mode = #tpu.pipeline_mode<synchronous>, transform_indices = @transform_2, window_bounds = array<i64: 8, 1>}, {transform_indices = @transform_3, window_bounds = array<i64: 1, 8, 16>}, {transform_indices = @transform_4, window_bounds = array<i64: 1, 8, 2>}]} {
    %cst = arith.constant 0.000000e+00 : f32
    %0 = vector.broadcast %cst : f32 to vector<8x16xf32>
    %c0 = arith.constant 0 : index
    %c0_0 = arith.constant 0 : index
    %c0_1 = arith.constant 0 : index
    %1 = vector.load %arg2[%c0, %c0_0, %c0_1] : memref<3x8x4xf32, #tpu.memory_space<vmem>>, vector<1x8x4xf32>
    %2 = vector.shape_cast %1 : vector<1x8x4xf32> to vector<8x4xf32>
    %c0_2 = arith.constant 0 : index
    %c0_3 = arith.constant 0 : index
    %c0_4 = arith.constant 0 : index
    %3 = vector.load %arg1[%c0_2, %c0_3, %c0_4] : memref<1x4x18xf32, #tpu.memory_space<vmem>>, vector<1x4x16xf32>
    %4 = vector.shape_cast %3 : vector<1x4x16xf32> to vector<4x16xf32>
    %cst_5 = arith.constant dense<0.000000e+00> : vector<8x16xf32>
    %5 = tpu.matmul %2, %4, %cst_5 {dimension_numbers = #tpu.dot_dimension_numbers<[1], [0], [0], [1], [0, 0, 1, 1], [], []>} : vector<8x4xf32>, vector<4x16xf32>, vector<8x16xf32> -> vector<8x16xf32>
    %6 = arith.addf %0, %5 : vector<8x16xf32>
    %c1 = arith.constant 1 : index
    %c0_6 = arith.constant 0 : index
    %c0_7 = arith.constant 0 : index
    %7 = vector.load %arg2[%c1, %c0_6, %c0_7] : memref<3x8x4xf32, #tpu.memory_space<vmem>>, vector<1x8x4xf32>
    %8 = vector.shape_cast %7 : vector<1x8x4xf32> to vector<8x4xf32>
    %c0_8 = arith.constant 0 : index
    %c0_9 = arith.constant 0 : index
    %c1_10 = arith.constant 1 : index
    %9 = vector.load %arg1[%c0_8, %c0_9, %c1_10] : memref<1x4x18xf32, #tpu.memory_space<vmem>>, vector<1x4x16xf32>
    %10 = vector.shape_cast %9 : vector<1x4x16xf32> to vector<4x16xf32>
    %cst_11 = arith.constant dense<0.000000e+00> : vector<8x16xf32>
    %11 = tpu.matmul %8, %10, %cst_11 {dimension_numbers = #tpu.dot_dimension_numbers<[1], [0], [0], [1], [0, 0, 1, 1], [], []>} : vector<8x4xf32>, vector<4x16xf32>, vector<8x16xf32> -> vector<8x16xf32>
    %12 = arith.addf %6, %11 : vector<8x16xf32>
    %c2 = arith.constant 2 : index
    %c0_12 = arith.constant 0 : index
    %c0_13 = arith.constant 0 : index
    %13 = vector.load %arg2[%c2, %c0_12, %c0_13] : memref<3x8x4xf32, #tpu.memory_space<vmem>>, vector<1x8x4xf32>
    %14 = vector.shape_cast %13 : vector<1x8x4xf32> to vector<8x4xf32>
    %c0_14 = arith.constant 0 : index
    %c0_15 = arith.constant 0 : index
    %c2_16 = arith.constant 2 : index
    %15 = vector.load %arg1[%c0_14, %c0_15, %c2_16] : memref<1x4x18xf32, #tpu.memory_space<vmem>>, vector<1x4x16xf32>
    %16 = vector.shape_cast %15 : vector<1x4x16xf32> to vector<4x16xf32>
    %cst_17 = arith.constant dense<0.000000e+00> : vector<8x16xf32>
    %17 = tpu.matmul %14, %16, %cst_17 {dimension_numbers = #tpu.dot_dimension_numbers<[1], [0], [0], [1], [0, 0, 1, 1], [], []>} : vector<8x4xf32>, vector<4x16xf32>, vector<8x16xf32> -> vector<8x16xf32>
    %18 = arith.addf %12, %17 : vector<8x16xf32>
    %c0_18 = arith.constant 0 : index
    %c0_19 = arith.constant 0 : index
    %19 = vector.load %arg3[%c0_18, %c0_19] : memref<8x1xf32, #tpu.memory_space<vmem>>, vector<8x1xf32>
    %20 = vector.broadcast %19 : vector<8x1xf32> to vector<8x16xf32>
    %21 = arith.addf %18, %20 : vector<8x16xf32>
    %c0_20 = arith.constant 0 : index
    %c0_21 = arith.constant 0 : index
    %c0_22 = arith.constant 0 : index
    %22 = vector.load %arg4[%c0_20, %c0_21, %c0_22] : memref<1x8x16xf32, #tpu.memory_space<vmem>>, vector<1x8x16xf32>
    %23 = vector.shape_cast %22 : vector<1x8x16xf32> to vector<8x16xf32>
    %24 = vector.shape_cast %21 : vector<8x16xf32> to vector<1x8x16xf32>
    tpu.vector_store %arg4[%c0_20, %c0_21, %c0_22], %24 {strides = array<i32>} : memref<1x8x16xf32, #tpu.memory_space<vmem>>, vector<1x8x16xf32>,
    %cst_23 = arith.constant dense<0.000000e+00> : vector<8xf32>
    %25 = vector.multi_reduction <add>, %21, %cst_23 [1] : vector<8x16xf32> to vector<8xf32>
    %26 = vector.shape_cast %25 : vector<8xf32> to vector<8x1xf32>
    %27 = arith.mulf %21, %21 : vector<8x16xf32>
    %cst_24 = arith.constant dense<0.000000e+00> : vector<8xf32>
    %28 = vector.multi_reduction <add>, %27, %cst_24 [1] : vector<8x16xf32> to vector<8xf32>
    %29 = vector.shape_cast %28 : vector<8xf32> to vector<8x1xf32>
    %30 = tpu.concatenate %26, %29 in 1 : vector<8x1xf32>, vector<8x1xf32> -> vector<8x2xf32>
    %c0_25 = arith.constant 0 : index
    %c0_26 = arith.constant 0 : index
    %c0_27 = arith.constant 0 : index
    %31 = vector.load %arg5[%c0_25, %c0_26, %c0_27] : memref<1x8x2xf32, #tpu.memory_space<vmem>>, vector<1x8x2xf32>
    %32 = vector.shape_cast %31 : vector<1x8x2xf32> to vector<8x2xf32>
    %33 = vector.shape_cast %30 : vector<8x2xf32> to vector<1x8x2xf32>
    tpu.vector_store %arg5[%c0_25, %c0_26, %c0_27], %33 {strides = array<i32>} : memref<1x8x2xf32, #tpu.memory_space<vmem>>, vector<1x8x2xf32>,
    return
  }
  func.func @transform_0(%arg0: i32) -> (i32, i32, i32) {
    %c0_i32 = arith.constant 0 : i32
    %c0_i32_0 = arith.constant 0 : i32
    %c0_i32_1 = arith.constant 0 : i32
    return %arg0, %c0_i32, %c0_i32_0 : i32, i32, i32
  }
  func.func @transform_1(%arg0: i32) -> (i32, i32, i32) {
    %c0_i32 = arith.constant 0 : i32
    %c0_i32_0 = arith.constant 0 : i32
    %c0_i32_1 = arith.constant 0 : i32
    %c0_i32_2 = arith.constant 0 : i32
    return %c0_i32, %c0_i32_0, %c0_i32_1 : i32, i32, i32
  }
  func.func @transform_2(%arg0: i32) -> (i32, i32) {
    %c0_i32 = arith.constant 0 : i32
    %c0_i32_0 = arith.constant 0 : i32
    %c0_i32_1 = arith.constant 0 : i32
    return %c0_i32, %c0_i32_0 : i32, i32
  }
  func.func @transform_3(%arg0: i32) -> (i32, i32, i32) {
    %c0_i32 = arith.constant 0 : i32
    %c0_i32_0 = arith.constant 0 : i32
    %c0_i32_1 = arith.constant 0 : i32
    return %arg0, %c0_i32, %c0_i32_0 : i32, i32, i32
  }
  func.func @transform_4(%arg0: i32) -> (i32, i32, i32) {
    %c0_i32 = arith.constant 0 : i32
    %c0_i32_0 = arith.constant 0 : i32
    %c0_i32_1 = arith.constant 0 : i32
    return %arg0, %c0_i32, %c0_i32_0 : i32, i32, i32
  }
}

</mosaic_0001>

<bundles_post_ra>
// kernel: tpu_custom_call.1
= control target key start
LH: loop header
LB: loop body
LE: loop exit
PB: predicated region body
PF: predicated region fallthrough
CT: control target
= control target key end

     0   :  { %10 = vsyncpa [#allocation3], 0  ;;  %s684_s0 = inlined_call_operand.vmem [shape: f32[2,4,18], index: 0, kind: input, shape index: {}]   ;;  %s685_s1 = inlined_call_operand.vmem [shape: f32[3,8,4], index: 1, kind: input, shape index: {}]   ;;  %s686_s2 = inlined_call_operand.vmem [shape: f32[8,1], index: 2, kind: input, shape index: {}]   ;;  %s687_s3 = inlined_call_operand.hbm [shape: f32[2,8,16], index: 3, kind: output, shape index: {0}]   ;;  %s688_s4 = inlined_call_operand.vmem [shape: f32[2,8,2], index: 4, kind: output, shape index: {1}]  }
   0x1   :  { %12 = vsyncpa [#allocation3 + $0x1], 0  ;;  %s574_s15 = smov 0   ;;  %s576_s16 = smov 0  }
   0x2   :  { %s578_s17 = smov 0   ;;  %s580_s18 = smov 0  }
   0x3 LB: > { %s595_s19 = sadd.s32 4294967295, %s544_s18   ;;  %s419_s20 = sadd.s32 4294967294, %s544_s18   ;;  %s544_s18 = sphi %s580_s18, %s694_s18   ;;  %s540_s17 = sphi %s578_s17, %s693_s17   ;;  %s536_s16 = sphi %s576_s16, %s692_s16   ;;  %s532_s15 = sphi %s574_s15, %s691_s15  }
   0x4   : > { %s599_s21 = sadd.s32 1, %s544_s18   ;;  %s93_s22 = sadd.s32 1, %s540_s17 }
   0x5   : > { %s90_s23 = ssub.s32 %s544_s18, %s599_s21  ;;  %p103_p0 = scmp.ne.s32.totalorder %s540_s17, %s536_s16 }
   0x6   : > { %p91_p1 = scmp.eq.s32.totalorder %s90_s23, 0  ;;  %p104_p2 = scmp.eq.s32.totalorder %s595_s19, 1 }
   0x7   : > { %p109_p3 = scmp.ne.s32.totalorder %s536_s16, %s532_s15  ;;  %p110_p4 = scmp.eq.s32.totalorder %s419_s20, 1 }
   0x8   : > { %s610_s24 = scalar_select %p91_p1, %s540_s17, %s93_s22  }
   0x9   : > { %p612_p5 = por %p104_p2, %p103_p0  ;;  %p616_p6 = por %p110_p4, %p109_p3 }
   0xa   : > { %p422_p7 = scmp.ge.s32.totalorder %s544_s18, 1  ;;  %p167_p8 = scmp.lt.s32.totalorder %s544_s18, 3 }
   0xc   : > { %p168_p9 = pnand %p422_p7, %p167_p8 }
   0xd   : > { %p196_p10 = scmp.lt.s32.totalorder (!%p168_p9), %s595_s19, 1  ;;  %s546_s6 = smov (!%p168_p9), 126  }
   0xe   : > { %171 = sbr.rel (%p168_p9) target bundleno = 402 (0x192), region = 32  ;;  %s547_s7 = smov (!%p168_p9), 127  }
   0xf   : > { %s187_s22 = sand.u32 (!%p168_p9), 1, %s536_s16   ;;  %s435_s23 = sshll.u32 (!%p168_p9), %s595_s19, 3 }
  0x10   : > { %s502_s13 = scalar_lea.hbm (!%p168_p9), %s687_s3, 16 }
  0x13   : > { %s624_s27 = scalar_select %p196_p10, %s595_s19, 1  ;;  %vm215_vm0 = vcmask 1043456   ;;  %vm211_vm1 = vcmask 31744   ;;  %v204_v1 = vld [vmem:[%s685_s1] sm:$0xff]  ;;  %v548_v3 = vmov 0   ;;  %v431_v4 = vld [vmem:[%s685_s1 + $0x10] sm:$0xff] }
  0x14   : > { %v293_v2 = vld [vmem:[%s686_s2] sm:$0xff]  ;;  %480 = vset.pattern.permute.xlu1 %v548_v3  ;;  %481 = vset.pattern.permute.xlu0 %v548_v3  ;;  %v426_v6 = vld [vmem:[%s685_s1 + $0x8] sm:$0xff]  ;;  %vm300_vm2 = vcmask 130048   ;;  %s314_s19 = scalar_lea.sflag [#allocation3], %s187_s22 }
  0x15   : > { %s424_s28 = sshll.u32 %s624_s27, 2  ;;  %296 = vperm.xlu1 %480, %v293_v2  }
  0x16   : > { %s199_s5 = scalar_lea.vmem %s684_s0, %s424_s28  ;;  %s423_s28 = sshll.u32 %s187_s22, 3 }
  0x17   : > { %v205_v0 = vld [vmem:[%s199_s5] sm:$0xf]  ;;  %s328_s5 = scalar_lea.hbm %s687_s3, %s435_s23 }
  0x18   : > { %265 = vrot.lane.b32.xlu0 %v205_v0, %s546_s6  ;;  %429 = vmatpush.msk.msra.mxu1 %vm215_vm0, %v205_v0  ;;  %s189_s6 = scalar_lea.vmem [#allocation2], %s423_s28  ;;  %s332_s8 = sshll.u32 %s328_s5, 4  ;;  %s333_s8 = int_to_ptr.hbm [resolvable:$true] %s332_s8 }
  0x19   : > { %430 = vmatmul.msk.f32.vlgmr.msra.gmra.mxu1 %vm211_vm1, %v204_v1  ;;  %s496_s9 = sshra.s32 %s333_s8, 4  ;;  %s497_s9 = int_to_ptr.hbm [resolvable:$true] %s496_s9 }
  0x1a   : > { %s498_s10 = scalar_lea.hbm %s497_s9, 8  ;;  %p503_p0 = scmp.lt.s32.totalorder %s497_s9, %s687_s3 }
  0x1b   : > { %p499_p11 = scmp.ne.s32.totalorder %s497_s9, %s498_s10  ;;  %p504_p1 = scmp.lt.s32.totalorder %s502_s13, %s498_s10 }
  0x1d   : > { %p500_p12 = pnand %p499_p11, %p612_p5  ;;  %p505_p2 = por %p504_p1, %p503_p0 }
  0x1f   : > { %p501_p13 = pneg %p500_p12 }
  0x20   : > { %209 = vrot.lane.b32.xlu0 %v205_v0, %s547_s7  ;;  %s330_s7 = sshll.u32 %s189_s6, 4  ;;  %s331_s7 = int_to_ptr.vmem [resolvable:$true] %s330_s7 }
  0x21   : > { %p506_p3 = pnand %p505_p2, %p501_p13 }
  0x87   : > { %v297_v12 = vpop.permute.xlu1 %296 }
  0x8a   : > { %v266_v5 = vpop.permute.xlu0 %265 }
  0x8b   : > { %432 = vmatpush.msk.msra.mxu2 %vm215_vm0, %v266_v5 }
  0x8c   : > { %433 = vmatmul.msk.f32.vlgmr.msra.gmra.mxu2 %vm211_vm1, %v431_v4 }
  0x92   : > { %v210_v7 = vpop.permute.xlu0 %209 }
  0x93   : > { %427 = vmatpush.msk.msra.mxu0 %vm215_vm0, %v210_v7 }
  0x94   : > { %428 = vmatmul.msk.f32.vlgmr.msra.gmra.mxu0 %vm211_vm1, %v426_v6 }
  0x96   : > { %v260_v8 = vpop.f32.mrf.mxu1 }
 0x10f   : > { %v289_v10 = vpop.f32.mrf.mxu2 }
 0x111   : > { %v235_v9 = vpop.f32.mrf.mxu0 }
 0x112   : > { %v261_v11 = vadd.f32 %v260_v8, %v235_v9 }
 0x114   : > { %v292_v13 = vadd.f32 %v289_v10, %v261_v11 }
 0x116   : > { %v299_v14 = vadd.f32 %v297_v12, %v292_v13 }
 0x118   : > { %v302_v15 = vsel %vm300_vm2, %v299_v14, 0.0  ;;  %v305_v16 = vmul.f32 %v299_v14, %v299_v14  ;;  %301 = vst.msk [vmem:[%s189_s6] sm:$0xff] %vm300_vm2, %v299_v14 }
 0x119   : > { %303 = vadd.xlane.f32.xlu1 %v302_v15 }
 0x11a   : > { %509 = shalt.err (!%p506_p3)
}
 0x11b   : > { %438 = dma.vmem_to_hbm [thread:$0]  (%p612_p5), %s331_s7, 128, %s333_s8, %s314_s19   ;;  %v306_v17 = vsel %vm300_vm2, %v305_v16, 0.0  ;;  %vm309_vm3 = vcmask 7168   ;;  %vm311_vm4 = vcmask 15360  }
 0x11c   : > { %307 = vadd.xlane.f32.xlu2 %v306_v17  ;;  %s425_s22 = sshll.u32 %s624_s27, 3 }
 0x11d   : > { %s203_s29 = scalar_lea.vmem %s688_s4, %s425_s22 }
 0x18c   : > { %v304_v18 = vpop.xlane.xlu1 %303 }
 0x18f   : > { %v308_v19 = vpop.xlane.xlu2 %307 }
 0x190   : > { %v310_v20 = vsel %vm309_vm3, %v304_v18, %v308_v19 }
 0x191   : > { %312 = vst.msk [vmem:[%s203_s29] sm:$0xff] %vm311_vm4, %v310_v20 }
 0x192 PF: > { %p444_p4 = scmp.ge.s32.totalorder %s544_s18, 2  ;;  %s347_s25 = sand.u32 1, %s532_s15  }
 0x193   : > { %s348_s27 = scalar_lea.sflag [#allocation3], %s347_s25 }
 0x194   : > { %p441_p5 = pnand %p444_p4, %p616_p6 }
 0x196   : > { %p442_p7 = pneg %p441_p5 }
 0x198   : > { %527 = dma.done.wait (%p442_p7), %s348_s27, 128  }
 0x199   : > { %529 = vsyncadd (%p442_p7), %s348_s27, 4294967168  ;;  %p15_p8 = scmp.ge.s32.totalorder %s599_s21, 4   ;;  %s691_s15 = smov %s536_s16 }
 0x19a   : > { %s692_s16 = smov %s540_s17  ;;  %s693_s17 = smov %s610_s24 }
 0x19b   : > { %s694_s18 = smov %s599_s21  ;;  %17 = sbr.rel (!%p15_p8) target bundleno = 3 (0x3), region = 81 }
 0x1a0   :  { %361 = vsyncpa [#allocation3], 1 }
 0x1a1   :  { %363 = vsyncpa [#allocation3 + $0x1], 1 }

</bundles_post_ra>
